<compile_context>
chip_gen: v6e
topology: v6e:2x2x1
jax: 0.10.0
libtpu: 0.0.40
codegen_flags: <defaults>
</compile_context>

<pallas_src>
import functools
import math

import jax
import jax.numpy as jnp
from jax.experimental import pallas as pl
from jax.experimental.pallas import tpu as pltpu


def conv_h_kernel(x_ref, w_ref, tid_ref, gamma_ref, beta_ref, o_ref, pooled_ref,
                  *, t_len, k_taps, n_valid):
    """One F-tile step: pool-first accumulate; conv + BN + ReLU only at the last step.

    x_ref:     (f_blk, g*C_in, NT_pad)   streamed x rows (f-major), lanes = n*T + t
    w_ref:     (K, C_out, g*C_in)        conv weight, 1/F avgpool folded in, g-replicated
    tid_ref:   (1, NT_pad) int32         within-batch time index; -1 on padded lanes
    gamma_ref: (C_out, 1)  beta_ref: (C_out, 1)
    o_ref:     (C_out, NT_pad)           lane-dense output block (resident across grid)
    pooled_ref:(g*C_in, NT_pad) f32      pooled-x accumulator (resident across grid)
    """
    fb = pl.program_id(0)
    pad = k_taps // 2
    nt_pad = pooled_ref.shape[1]

    @pl.when(fb == 0)
    def _init():
        pooled_ref[...] = jnp.zeros_like(pooled_ref)

    # Pool-first: reduce the streamed tile over its frequency rows (leading, untiled
    # axis -> plain vreg adds).  bf16 streams are widened to f32 before any VPU work.
    xb = x_ref[...].astype(jnp.float32)                       # (f_blk, g*C_in, NT_pad)
    pooled_ref[...] += jnp.sum(xb, axis=0)

    @pl.when(fb == pl.num_programs(0) - 1)
    def _finalize():
        pooled = pooled_ref[...]                              # (g*C_in, NT_pad)
        t_idx = tid_ref[...]                                  # (1, NT_pad)

        # K-tap conv over time: per tap one static lane roll (XLU) + mask (VPU) + a small
        # MXU matmul.  The mask supplies the conv zero padding, the batch fences and the
        # lane padding, so the rolled wrap-around lanes never leak.
        acc = jnp.zeros(o_ref.shape, jnp.float32)             # (C_out, NT_pad)
        for k in range(k_taps):                               # K small & static -> unrolled
            d = k - pad
            if d == 0:
                tap = pooled
            else:
                tap = pltpu.roll(pooled, shift=(-d) % nt_pad, axis=1)
                valid = jnp.logical_and(t_idx + d >= 0, t_idx + d < t_len)
                tap = jnp.where(valid, tap, 0.0)
            acc = acc + jnp.dot(w_ref[k], tap, preferred_element_type=jnp.float32)

        # BatchNorm1d, training mode: biased batch statistics over the true N*T lanes
        # (padded lanes excluded), then ReLU.  Conv bias is omitted on purpose: the
        # per-channel batch-mean subtraction cancels it exactly.
        lane_valid = t_idx >= 0
        inv_n = 1.0 / n_valid
        acc_v = jnp.where(lane_valid, acc, 0.0)
        mean = jnp.sum(acc_v, axis=1, keepdims=True) * inv_n
        cen = jnp.where(lane_valid, acc - mean, 0.0)
        var = jnp.sum(cen * cen, axis=1, keepdims=True) * inv_n
        y = cen * jax.lax.rsqrt(var + 1e-5) * gamma_ref[...] + beta_ref[...]
        o_ref[...] = jnp.maximum(y, 0.0).astype(o_ref.dtype)


def _vmem_capacity_bytes():
    """Best-effort per-core VMEM capacity; conservative (v7x, 64 MiB) fallback."""
    try:
        cap = getattr(pltpu.get_tpu_info(), "vmem_capacity_bytes", 0)
        if cap:
            return int(cap)
    except Exception:
        pass
    return 64 << 20


def _pick_rows_per_step(n_rows, row_sublanes, nt_pad, x_itemsize, c_out, k_taps,
                        budget_bytes):
    """Largest divisor of n_rows whose steady-state VMEM footprint fits the budget."""
    fixed = (2 * k_taps * c_out * row_sublanes * 4     # conv weight (double-buffered)
             + 2 * nt_pad * 4                          # lane time ids
             + 4 * c_out * 4                           # gamma + beta
             + row_sublanes * nt_pad * 4               # pooled accumulator scratch
             + 2 * c_out * nt_pad * 4)                 # output block
    per_row = 2 * row_sublanes * nt_pad * x_itemsize   # double-buffered x rows
    divisors = [d for d in range(1, n_rows + 1) if n_rows % d == 0]
    fitting = [d for d in divisors if fixed + d * per_row <= budget_bytes]
    # TODO(synk): if even a single row does not fit (huge N*T), tile the lane axis as
    # well (needs a two-pass BatchNorm); not required at these model sizes.
    return max(fitting) if fitting else 1


def conv_h_forward(x, weight, bias, gamma, beta, *,
                   stream_dtype=jnp.float32, f_block=None):
    """x: (N, C_in, F, T); weight: (C_out, C_in, K); bias/gamma/beta: (C_out,).

    Matches Conv_H.forward with BatchNorm1d in training mode (batch statistics).
    On v6e/v7x pass stream_dtype=jnp.bfloat16 to halve HBM traffic of the x stream.
    """
    # TODO(synk): BatchNorm running_mean/running_var buffer updates (PyTorch training-mode
    # side effect) are not produced here; only the forward output is computed.
    n, c_in, f, t = x.shape
    c_out, c_in_w, k_taps = weight.shape
    assert c_in_w == c_in
    assert k_taps % 2 == 1, "even filter_length changes the output length (unsupported)"
    nt = n * t
    nt_pad = ((nt + 127) // 128) * 128            # lane-dense stores, roll-friendly width
    x_itemsize = jnp.dtype(stream_dtype).itemsize

    # Group g frequency rows per sublane slab so g*C_in is a multiple of the native
    # sublane granule (8 for f32, 16 for bf16); correctness never depends on g.
    granule = 8 * (4 // x_itemsize)
    g = granule // math.gcd(c_in, granule)
    while g > 1 and f % g:
        g //= 2
    n_rows = f // g
    row_sublanes = g * c_in

    # --- layout plumbing (plain XLA, outside the kernel) ---
    # x -> (F/g, g*C_in, NT_pad): leading axis is the streamed/reduced frequency axis,
    # lanes are n*T + t, zero padded to a multiple of 128.
    x3 = jnp.transpose(x, (2, 1, 0, 3)).reshape(n_rows, row_sublanes, nt)
    x3 = jnp.pad(x3, ((0, 0), (0, 0), (0, nt_pad - nt))).astype(stream_dtype)

    # Conv weight with the 1/F average pool folded in, replicated over the g row groups
    # (each input channel appears g times on the contraction axis).
    wt = jnp.transpose(weight, (2, 0, 1)).astype(jnp.float32)        # (K, C_out, C_in)
    w3 = jnp.tile(wt, (1, 1, g)) / f                                  # (K, C_out, g*C_in)

    # Within-batch time index of every lane; -1 marks padded lanes.
    t_ids = jnp.concatenate([
        jnp.tile(jnp.arange(t, dtype=jnp.int32), n),
        jnp.full((nt_pad - nt,), -1, jnp.int32),
    ]).reshape(1, nt_pad)

    g2 = gamma.reshape(c_out, 1).astype(jnp.float32)
    b2 = beta.reshape(c_out, 1).astype(jnp.float32)
    # Conv bias is NOT passed: training-mode BatchNorm subtracts the per-channel batch
    # mean, which cancels the bias exactly.
    del bias

    # Generation-aware VMEM budgeting.
    vmem_cap = _vmem_capacity_bytes()
    if f_block is None:
        rows_per_step = _pick_rows_per_step(n_rows, row_sublanes, nt_pad, x_itemsize,
                                            c_out, k_taps, budget_bytes=vmem_cap // 2)
    else:
        assert f_block % g == 0 and f % f_block == 0, (f_block, g, f)
        rows_per_step = f_block // g
    nfb = n_rows // rows_per_step

    kernel = functools.partial(conv_h_kernel, t_len=t, k_taps=k_taps, n_valid=nt)

    # TODO(synk): for v7x dual-TC, add a "parallel" lane-tile grid axis with a two-pass
    # BatchNorm (stats pass + normalize pass); single-pass batch statistics keep this
    # kernel on one TensorCore.
    out2 = pl.pallas_call(
        kernel,
        out_shape=jax.ShapeDtypeStruct((c_out, nt_pad), jnp.float32),
        grid=(nfb,),
        in_specs=[
            pl.BlockSpec((rows_per_step, row_sublanes, nt_pad), lambda i: (i, 0, 0)),
            pl.BlockSpec((k_taps, c_out, row_sublanes), lambda i: (0, 0, 0)),
            pl.BlockSpec((1, nt_pad), lambda i: (0, 0)),
            pl.BlockSpec((c_out, 1), lambda i: (0, 0)),
            pl.BlockSpec((c_out, 1), lambda i: (0, 0)),
        ],
        out_specs=pl.BlockSpec((c_out, nt_pad), lambda i: (0, 0)),
        scratch_shapes=[pltpu.VMEM((row_sublanes, nt_pad), jnp.float32)],
        compiler_params=pltpu.CompilerParams(
            dimension_semantics=("arbitrary",),            # F is a reduction axis
            vmem_limit_bytes=int(min(vmem_cap, max(vmem_cap * 0.9, 32 << 20)))),
    )(x3, w3, t_ids, g2, b2)

    # (C_out, NT_pad) -> (N, C_out, T)
    return jnp.transpose(out2[:, :nt].reshape(c_out, n, t), (1, 0, 2))


def conv_h_reference(x, weight, bias, gamma, beta):
    """Plain-JAX mirror of the PyTorch forward (training-mode BatchNorm)."""
    pooled = jnp.mean(x, axis=2)                                     # (N, C_in, T)
    k = weight.shape[2]
    pad = k // 2
    conv = jax.lax.conv_general_dilated(
        pooled, weight, window_strides=(1,), padding=[(pad, pad)],
        dimension_numbers=('NCH', 'OIH', 'NCH'),
        precision=jax.lax.Precision.HIGHEST)
    conv = conv + bias[None, :, None]
    mean = jnp.mean(conv, axis=(0, 2), keepdims=True)
    var = jnp.mean((conv - mean) ** 2, axis=(0, 2), keepdims=True)
    normed = (conv - mean) / jnp.sqrt(var + 1e-5)
    y = normed * gamma[None, :, None] + beta[None, :, None]
    return jnp.maximum(y, 0.0)


if __name__ == "__main__":
    # batch=2, in_ch=4, freq=16, time=16, out_ch=8, filter_length=3
    N, C_in, F, T = 2, 4, 16, 16
    C_out, K = 8, 3

    key = jax.random.PRNGKey(0)
    kx, kw, kb = jax.random.split(key, 3)

    x = jax.random.normal(kx, (N, C_in, F, T), dtype=jnp.float32)
    bound = 1.0 / (C_in * K) ** 0.5              # PyTorch Conv1d default init bound
    weight = jax.random.uniform(kw, (C_out, C_in, K), jnp.float32, -bound, bound)
    bias = jax.random.uniform(kb, (C_out,), jnp.float32, -bound, bound)
    gamma = jnp.ones((C_out,), jnp.float32)      # BatchNorm1d default weight
    beta = jnp.zeros((C_out,), jnp.float32)      # BatchNorm1d default bias

    ref = conv_h_reference(x, weight, bias, gamma, beta)

    # f32 streaming, auto tile (single F step).
    out = jax.block_until_ready(conv_h_forward(x, weight, bias, gamma, beta))
    assert out.shape == (N, C_out, T), out.shape
    err = float(jnp.max(jnp.abs(out - ref)))
    assert err < 5e-4, err

    # Force a multi-step F reduction to exercise the resident pooled accumulator path.
    out_multi = jax.block_until_ready(
        conv_h_forward(x, weight, bias, gamma, beta, f_block=4))
    err_multi = float(jnp.max(jnp.abs(out_multi - ref)))
    assert err_multi < 5e-4, err_multi

    # bf16 x streaming (v6e/v7x HBM-roofline path); compare against a reference fed the
    # same bf16-rounded activations (accumulation stays f32 in both paths).
    out_bf16 = jax.block_until_ready(
        conv_h_forward(x, weight, bias, gamma, beta, stream_dtype=jnp.bfloat16))
    ref_bf16 = conv_h_reference(x.astype(jnp.bfloat16).astype(jnp.float32),
                                weight, bias, gamma, beta)
    err_bf16 = float(jnp.max(jnp.abs(out_bf16 - ref_bf16)))
    assert err_bf16 < 2e-3, err_bf16

    print("KERNEL_OK")
</pallas_src>

<mosaic_0001>
module attributes {stable_mosaic.version = 11 : i64} {
  func.func @conv_h_kernel(%arg0: i32, %arg1: memref<8x8x128xf32, #tpu.memory_space<vmem>>, %arg2: memref<3x8x8xf32, #tpu.memory_space<vmem>>, %arg3: memref<1x128xi32, #tpu.memory_space<vmem>>, %arg4: memref<8x1xf32, #tpu.memory_space<vmem>>, %arg5: memref<8x1xf32, #tpu.memory_space<vmem>>, %arg6: memref<8x128xf32, #tpu.memory_space<vmem>>, %arg7: memref<8x128xf32, #tpu.memory_space<vmem>>) attributes {dimension_semantics = [#tpu.dimension_semantics<arbitrary>], iteration_bounds = array<i64: 1>, scalar_prefetch = 0 : i64, scratch_operands = 1 : i64, tpu.core_type = #tpu.core_type<tc>, window_params = [{transform_indices = @transform_0, window_bounds = array<i64: 8, 8, 128>}, {pipeline_mode = #tpu.pipeline_mode<synchronous>, transform_indices = @transform_1, window_bounds = array<i64: 3, 8, 8>}, {pipeline_mode = #tpu.pipeline_mode<synchronous>, transform_indices = @transform_2, window_bounds = array<i64: 1, 128>}, {pipeline_mode = #tpu.pipeline_mode<synchronous>, transform_indices = @transform_3, window_bounds = array<i64: 8, 1>}, {pipeline_mode = #tpu.pipeline_mode<synchronous>, transform_indices = @transform_4, window_bounds = array<i64: 8, 1>}, {pipeline_mode = #tpu.pipeline_mode<synchronous>, transform_indices = @transform_5, window_bounds = array<i64: 8, 128>}]} {
    %c0_i32 = arith.constant 0 : i32
    %0 = arith.cmpi eq, %arg0, %c0_i32 : i32
    %1 = arith.extui %0 : i1 to i32
    %c0_i32_0 = arith.constant 0 : i32
    %2 = arith.cmpi ne, %1, %c0_i32_0 : i32
    scf.if %2 {
      %cst_9 = arith.constant 0.000000e+00 : f32
      %11 = vector.broadcast %cst_9 : f32 to vector<8x128xf32>
      %c0_10 = arith.constant 0 : index
      %c0_11 = arith.constant 0 : index
      %12 = vector.load %arg7[%c0_10, %c0_11] : memref<8x128xf32, #tpu.memory_space<vmem>>, vector<8x128xf32>
      tpu.vector_store %arg7[%c0_10, %c0_11], %11 {strides = array<i32>} : memref<8x128xf32, #tpu.memory_space<vmem>>, vector<8x128xf32>,
    } else {
    }
    %c0 = arith.constant 0 : index
    %c0_1 = arith.constant 0 : index
    %c0_2 = arith.constant 0 : index
    %3 = vector.load %arg1[%c0, %c0_1, %c0_2] : memref<8x8x128xf32, #tpu.memory_space<vmem>>, vector<8x8x128xf32>
    %c0_3 = arith.constant 0 : index
    %c0_4 = arith.constant 0 : index
    %4 = vector.load %arg7[%c0_3, %c0_4] : memref<8x128xf32, #tpu.memory_space<vmem>>, vector<8x128xf32>
    %cst = arith.constant dense<0.000000e+00> : vector<8x128xf32>
    %5 = vector.multi_reduction <add>, %3, %cst [0] : vector<8x8x128xf32> to vector<8x128xf32>
    %6 = arith.addf %4, %5 : vector<8x128xf32>
    %c0_5 = arith.constant 0 : index
    %c0_6 = arith.constant 0 : index
    %7 = vector.load %arg7[%c0_5, %c0_6] : memref<8x128xf32, #tpu.memory_space<vmem>>, vector<8x128xf32>
    tpu.vector_store %arg7[%c0_5, %c0_6], %6 {strides = array<i32>} : memref<8x128xf32, #tpu.memory_space<vmem>>, vector<8x128xf32>,
    %c0_i32_7 = arith.constant 0 : i32
    %8 = arith.cmpi eq, %arg0, %c0_i32_7 : i32
    %9 = arith.extui %8 : i1 to i32
    %c0_i32_8 = arith.constant 0 : i32
    %10 = arith.cmpi ne, %9, %c0_i32_8 : i32
    scf.if %10 {
      %c0_9 = arith.constant 0 : index
      %c0_10 = arith.constant 0 : index
      %11 = vector.load %arg7[%c0_9, %c0_10] : memref<8x128xf32, #tpu.memory_space<vmem>>, vector<8x128xf32>
      %c0_11 = arith.constant 0 : index
      %c0_12 = arith.constant 0 : index
      %12 = vector.load %arg3[%c0_11, %c0_12] : memref<1x128xi32, #tpu.memory_space<vmem>>, vector<1x128xi32>
      %cst_13 = arith.constant 0.000000e+00 : f32
      %13 = vector.broadcast %cst_13 : f32 to vector<8x128xf32>
      %c1_i32 = arith.constant 1 : i32
      %14 = tpu.dynamic_rotate %11 by %c1_i32 dim 1 : vector<8x128xf32>, i32 -> vector<8x128xf32>
      %c-1_i32 = arith.constant -1 : i32
      %15 = vector.broadcast %c-1_i32 : i32 to vector<1x128xi32>
      %16 = arith.addi %12, %15 : vector<1x128xi32>
      %c0_i32_14 = arith.constant 0 : i32
      %17 = vector.broadcast %c0_i32_14 : i32 to vector<1x128xi32>
      %18 = arith.cmpi sge, %16, %17 : vector<1x128xi32>
      %c-1_i32_15 = arith.constant -1 : i32
      %19 = vector.broadcast %c-1_i32_15 : i32 to vector<1x128xi32>
      %20 = arith.addi %12, %19 : vector<1x128xi32>
      %c16_i32 = arith.constant 16 : i32
      %21 = vector.broadcast %c16_i32 : i32 to vector<1x128xi32>
      %22 = arith.cmpi slt, %20, %21 : vector<1x128xi32>
      %23 = arith.andi %18, %22 : vector<1x128xi1>
      %cst_16 = arith.constant 0.000000e+00 : f32
      %24 = vector.shape_cast %23 : vector<1x128xi1> to vector<1x128xi1>
      %25 = vector.broadcast %24 : vector<1x128xi1> to vector<8x128xi1>
      %26 = vector.broadcast %cst_16 : f32 to vector<8x128xf32>
      %27 = arith.select %25, %14, %26 : vector<8x128xi1>, vector<8x128xf32>
      %c0_17 = arith.constant 0 : index
      %c0_18 = arith.constant 0 : index
      %c0_19 = arith.constant 0 : index
      %28 = vector.load %arg2[%c0_17, %c0_18, %c0_19] : memref<3x8x8xf32, #tpu.memory_space<vmem>>, vector<1x8x8xf32>
      %29 = vector.shape_cast %28 : vector<1x8x8xf32> to vector<8x8xf32>
      %cst_20 = arith.constant dense<0.000000e+00> : vector<8x128xf32>
      %30 = tpu.matmul %29, %27, %cst_20 {dimension_numbers = #tpu.dot_dimension_numbers<[1], [0], [0], [1], [0, 0, 1, 1], [], []>} : vector<8x8xf32>, vector<8x128xf32>, vector<8x128xf32> -> vector<8x128xf32>
      %31 = arith.addf %13, %30 : vector<8x128xf32>
      %c1 = arith.constant 1 : index
      %c0_21 = arith.constant 0 : index
      %c0_22 = arith.constant 0 : index
      %32 = vector.load %arg2[%c1, %c0_21, %c0_22] : memref<3x8x8xf32, #tpu.memory_space<vmem>>, vector<1x8x8xf32>
      %33 = vector.shape_cast %32 : vector<1x8x8xf32> to vector<8x8xf32>
      %cst_23 = arith.constant dense<0.000000e+00> : vector<8x128xf32>
      %34 = tpu.matmul %33, %11, %cst_23 {dimension_numbers = #tpu.dot_dimension_numbers<[1], [0], [0], [1], [0, 0, 1, 1], [], []>} : vector<8x8xf32>, vector<8x128xf32>, vector<8x128xf32> -> vector<8x128xf32>
      %35 = arith.addf %31, %34 : vector<8x128xf32>
      %c127_i32 = arith.constant 127 : i32
      %36 = tpu.dynamic_rotate %11 by %c127_i32 dim 1 : vector<8x128xf32>, i32 -> vector<8x128xf32>
      %c1_i32_24 = arith.constant 1 : i32
      %37 = vector.broadcast %c1_i32_24 : i32 to vector<1x128xi32>
      %38 = arith.addi %12, %37 : vector<1x128xi32>
      %c0_i32_25 = arith.constant 0 : i32
      %39 = vector.broadcast %c0_i32_25 : i32 to vector<1x128xi32>
      %40 = arith.cmpi sge, %38, %39 : vector<1x128xi32>
      %c1_i32_26 = arith.constant 1 : i32
      %41 = vector.broadcast %c1_i32_26 : i32 to vector<1x128xi32>
      %42 = arith.addi %12, %41 : vector<1x128xi32>
      %c16_i32_27 = arith.constant 16 : i32
      %43 = vector.broadcast %c16_i32_27 : i32 to vector<1x128xi32>
      %44 = arith.cmpi slt, %42, %43 : vector<1x128xi32>
      %45 = arith.andi %40, %44 : vector<1x128xi1>
      %cst_28 = arith.constant 0.000000e+00 : f32
      %46 = vector.shape_cast %45 : vector<1x128xi1> to vector<1x128xi1>
      %47 = vector.broadcast %46 : vector<1x128xi1> to vector<8x128xi1>
      %48 = vector.broadcast %cst_28 : f32 to vector<8x128xf32>
      %49 = arith.select %47, %36, %48 : vector<8x128xi1>, vector<8x128xf32>
      %c2 = arith.constant 2 : index
      %c0_29 = arith.constant 0 : index
      %c0_30 = arith.constant 0 : index
      %50 = vector.load %arg2[%c2, %c0_29, %c0_30] : memref<3x8x8xf32, #tpu.memory_space<vmem>>, vector<1x8x8xf32>
      %51 = vector.shape_cast %50 : vector<1x8x8xf32> to vector<8x8xf32>
      %cst_31 = arith.constant dense<0.000000e+00> : vector<8x128xf32>
      %52 = tpu.matmul %51, %49, %cst_31 {dimension_numbers = #tpu.dot_dimension_numbers<[1], [0], [0], [1], [0, 0, 1, 1], [], []>} : vector<8x8xf32>, vector<8x128xf32>, vector<8x128xf32> -> vector<8x128xf32>
      %53 = arith.addf %35, %52 : vector<8x128xf32>
      %c0_i32_32 = arith.constant 0 : i32
      %54 = vector.broadcast %c0_i32_32 : i32 to vector<1x128xi32>
      %55 = arith.cmpi sge, %12, %54 : vector<1x128xi32>
      %cst_33 = arith.constant 0.000000e+00 : f32
      %56 = vector.shape_cast %55 : vector<1x128xi1> to vector<1x128xi1>
      %57 = vector.broadcast %56 : vector<1x128xi1> to vector<8x128xi1>
      %58 = vector.broadcast %cst_33 : f32 to vector<8x128xf32>
      %59 = arith.select %57, %53, %58 : vector<8x128xi1>, vector<8x128xf32>
      %cst_34 = arith.constant dense<0.000000e+00> : vector<8xf32>
      %60 = vector.multi_reduction <add>, %59, %cst_34 [1] : vector<8x128xf32> to vector<8xf32>
      %61 = vector.shape_cast %60 : vector<8xf32> to vector<8x1xf32>
      %cst_35 = arith.constant 3.125000e-02 : f32
      %62 = vector.broadcast %cst_35 : f32 to vector<8x1xf32>
      %63 = arith.mulf %61, %62 : vector<8x1xf32>
      %64 = vector.broadcast %63 : vector<8x1xf32> to vector<8x128xf32>
      %65 = arith.subf %53, %64 : vector<8x128xf32>
      %cst_36 = arith.constant 0.000000e+00 : f32
      %66 = vector.shape_cast %55 : vector<1x128xi1> to vector<1x128xi1>
      %67 = vector.broadcast %66 : vector<1x128xi1> to vector<8x128xi1>
      %68 = vector.broadcast %cst_36 : f32 to vector<8x128xf32>
      %69 = arith.select %67, %65, %68 : vector<8x128xi1>, vector<8x128xf32>
      %70 = arith.mulf %69, %69 : vector<8x128xf32>
      %cst_37 = arith.constant dense<0.000000e+00> : vector<8xf32>
      %71 = vector.multi_reduction <add>, %70, %cst_37 [1] : vector<8x128xf32> to vector<8xf32>
      %72 = vector.shape_cast %71 : vector<8xf32> to vector<8x1xf32>
      %cst_38 = arith.constant 3.125000e-02 : f32
      %73 = vector.broadcast %cst_38 : f32 to vector<8x1xf32>
      %74 = arith.mulf %72, %73 : vector<8x1xf32>
      %cst_39 = arith.constant 9.99999974E-6 : f32
      %75 = vector.broadcast %cst_39 : f32 to vector<8x1xf32>
      %76 = arith.addf %74, %75 : vector<8x1xf32>
      %77 = math.rsqrt %76 : vector<8x1xf32>
      %78 = vector.broadcast %77 : vector<8x1xf32> to vector<8x128xf32>
      %79 = arith.mulf %69, %78 : vector<8x128xf32>
      %c0_40 = arith.constant 0 : index
      %c0_41 = arith.constant 0 : index
      %80 = vector.load %arg4[%c0_40, %c0_41] : memref<8x1xf32, #tpu.memory_space<vmem>>, vector<8x1xf32>
      %81 = vector.broadcast %80 : vector<8x1xf32> to vector<8x128xf32>
      %82 = arith.mulf %79, %81 : vector<8x128xf32>
      %c0_42 = arith.constant 0 : index
      %c0_43 = arith.constant 0 : index
      %83 = vector.load %arg5[%c0_42, %c0_43] : memref<8x1xf32, #tpu.memory_space<vmem>>, vector<8x1xf32>
      %84 = vector.broadcast %83 : vector<8x1xf32> to vector<8x128xf32>
      %85 = arith.addf %82, %84 : vector<8x128xf32>
      %cst_44 = arith.constant 0.000000e+00 : f32
      %86 = vector.broadcast %cst_44 : f32 to vector<8x128xf32>
      %87 = arith.maximumf %85, %86 : vector<8x128xf32>
      %c0_45 = arith.constant 0 : index
      %c0_46 = arith.constant 0 : index
      %88 = vector.load %arg6[%c0_45, %c0_46] : memref<8x128xf32, #tpu.memory_space<vmem>>, vector<8x128xf32>
      tpu.vector_store %arg6[%c0_45, %c0_46], %87 {strides = array<i32>} : memref<8x128xf32, #tpu.memory_space<vmem>>, vector<8x128xf32>,
    } else {
    }
    return
  }
  func.func @transform_0(%arg0: i32) -> (i32, i32, i32) {
    %c0_i32 = arith.constant 0 : i32
    %c0_i32_0 = arith.constant 0 : i32
    %c0_i32_1 = arith.constant 0 : i32
    return %arg0, %c0_i32, %c0_i32_0 : i32, i32, i32
  }
  func.func @transform_1(%arg0: i32) -> (i32, i32, i32) {
    %c0_i32 = arith.constant 0 : i32
    %c0_i32_0 = arith.constant 0 : i32
    %c0_i32_1 = arith.constant 0 : i32
    %c0_i32_2 = arith.constant 0 : i32
    return %c0_i32, %c0_i32_0, %c0_i32_1 : i32, i32, i32
  }
  func.func @transform_2(%arg0: i32) -> (i32, i32) {
    %c0_i32 = arith.constant 0 : i32
    %c0_i32_0 = arith.constant 0 : i32
    %c0_i32_1 = arith.constant 0 : i32
    return %c0_i32, %c0_i32_0 : i32, i32
  }
  func.func @transform_3(%arg0: i32) -> (i32, i32) {
    %c0_i32 = arith.constant 0 : i32
    %c0_i32_0 = arith.constant 0 : i32
    %c0_i32_1 = arith.constant 0 : i32
    return %c0_i32, %c0_i32_0 : i32, i32
  }
  func.func @transform_4(%arg0: i32) -> (i32, i32) {
    %c0_i32 = arith.constant 0 : i32
    %c0_i32_0 = arith.constant 0 : i32
    %c0_i32_1 = arith.constant 0 : i32
    return %c0_i32, %c0_i32_0 : i32, i32
  }
  func.func @transform_5(%arg0: i32) -> (i32, i32) {
    %c0_i32 = arith.constant 0 : i32
    %c0_i32_0 = arith.constant 0 : i32
    %c0_i32_1 = arith.constant 0 : i32
    return %c0_i32, %c0_i32_0 : i32, i32
  }
}

</mosaic_0001>

<bundles_post_ra>
// kernel: tpu_custom_call.1
= control target key start
LH: loop header
LB: loop body
LE: loop exit
PB: predicated region body
PF: predicated region fallthrough
CT: control target
= control target key end

     0   :  { %10 = vsyncpa [#allocation4], 0  ;;  %s551_s0 = inlined_call_operand.hbm [shape: f32[8,8,128], index: 0, kind: input, shape index: {}]   ;;  %s552_s1 = inlined_call_operand.hbm [shape: f32[3,8,8], index: 1, kind: input, shape index: {}]   ;;  %s553_s2 = inlined_call_operand.vmem [shape: s32[1,128], index: 2, kind: input, shape index: {}]   ;;  %s554_s3 = inlined_call_operand.vmem [shape: f32[8,1], index: 3, kind: input, shape index: {}]   ;;  %s555_s4 = inlined_call_operand.vmem [shape: f32[8,1], index: 4, kind: input, shape index: {}]   ;;  %s556_s5 = inlined_call_operand.hbm [shape: f32[8,128], index: 5, kind: output, shape index: {}]  }
   0x1   :  { %11 = vsyncpa [#allocation7], 0 }
   0x2   :  { %12 = vsyncpa [#allocation5], 0  ;;  %s487_s18 = smov [#allocation3]  }
   0x3   :  { %s18_s19 = sshll.u32 %s487_s18, 4  ;;  %s19_s19 = int_to_ptr.vmem [resolvable:$true] %s18_s19 }
   0x4   :  { %s429_s20 = scalar_lea.vmem %s19_s19, 1024  ;;  %p434_p1 = scmp.lt.s32.totalorder %s19_s19, %s19_s19 }
   0x5   :  { %p430_p0 = scmp.ne.s32.totalorder %s19_s19, %s429_s20  ;;  %p435_p2 = scmp.lt.s32.totalorder %s429_s20, %s429_s20 }
   0x7   :  { %p436_p3 = por %p435_p2, %p434_p1 }
   0x9   :  { %p437_p4 = pnand %p436_p3, %p430_p0 }
   0xb   :  { %440 = shalt.err (!%p437_p4)
}
   0xc   :  { %s488_s21 = smov 128   ;;  %s489_s22 = smov 8  }
   0xd   :  { %24 = dma.hbm_to_vmem [thread:$0]  %s551_s0, 1024, %s19_s19, [#allocation4], %s488_s21, %s488_s21, %s489_s22  }
   0xe   :  { %s490_s25 = smov [#allocation6]  }
   0xf   :  { %s30_s26 = sshll.u32 %s490_s25, 4  ;;  %s31_s26 = int_to_ptr.vmem [resolvable:$true] %s30_s26 }
  0x10   :  { %s449_s27 = scalar_lea.vmem %s31_s26, 384  ;;  %p454_p6 = scmp.lt.s32.totalorder %s31_s26, %s31_s26 }
  0x11   :  { %p450_p5 = scmp.ne.s32.totalorder %s31_s26, %s449_s27  ;;  %p455_p7 = scmp.lt.s32.totalorder %s449_s27, %s449_s27 }
  0x13   :  { %p456_p8 = por %p455_p7, %p454_p6 }
  0x15   :  { %p457_p9 = pnand %p456_p8, %p450_p5 }
  0x17   :  { %460 = shalt.err (!%p457_p9)
}
  0x18   :  { %36 = dma.hbm_to_vmem [thread:$0]  %s552_s1, 384, %s31_s26, [#allocation7], %s488_s21, %s488_s21, %s489_s22  }
  0x19   :  { %481 = dma.done.wait [#allocation4], 1024  }
  0x1a   :  { %482 = vsyncadd [#allocation4], 4294966272 }
  0x1b   :  { %483 = dma.done.wait [#allocation7], 384  }
  0x1c   :  { %484 = vsyncadd [#allocation7], 4294966912  ;;  %v491_v0 = vmov 0.0   ;;  %v492_v1 = vmov 0   ;;  %v54_v2 = vld [vmem:[#allocation3] sm:$0xff]  ;;  %v55_v3 = vld [vmem:[#allocation3 + $0x8] sm:$0xff]  ;;  %v84_v20 = vlaneseq }
  0x1d   :  { %392 = vmatprep.subr.mxu0 %v491_v0  ;;  %397 = vmatprep.subr.mxu1 %v491_v0  ;;  %v56_v4 = vld [vmem:[#allocation3 + $0x10] sm:$0xff]  ;;  %vm493_vm0 = vmmov 0   ;;  %v63_v5 = vadd.f32 %v55_v3, %v54_v2  ;;  %v57_v6 = vld [vmem:[#allocation3 + $0x18] sm:$0xff]  ;;  %v58_v8 = vld [vmem:[#allocation3 + $0x20] sm:$0xff]  ;;  %vm93_vm1 = vcmask 64512   ;;  %s494_s0 = smov 1  }
  0x1e   :  { %417 = vset.pattern.permute.xlu0 %v492_v1  ;;  %418 = vset.pattern.permute.xlu1 %v492_v1  ;;  %v59_v10 = vld [vmem:[#allocation3 + $0x28] sm:$0xff]  ;;  %v60_v12 = vld [vmem:[#allocation3 + $0x30] sm:$0xff]  ;;  %v61_v14 = vld [vmem:[#allocation3 + $0x38] sm:$0xff]  ;;  %s495_s1 = smov 127   ;;  %v85_v22 = vshrl.u32 %v84_v20, 7 }
  0x1f   :  { %394 = vmatprep.mubr.msk.f32.mxu0 %vm493_vm0, %v491_v0  ;;  %399 = vmatprep.mubr.msk.f32.mxu1 %vm493_vm0, %v491_v0  ;;  %v64_v7 = vadd.f32 %v63_v5, %v56_v4  ;;  %v92_v17 = vld [vmem:[#allocation6 + $0x8] sm:$0xff]  ;;  %v76_v18 = vld [vmem:[%s553_s2] sm:$0x1]  ;;  %v254_v30 = vld [vmem:[#allocation6 + $0x10] sm:$0xff] }
  0x20   :  { %v79_v19 = vadd.s32 4294967295, %v76_v18  ;;  %v242_v21 = vadd.s32 1, %v76_v18  ;;  %v86_v23 = vsub.s32 0, %v85_v22  ;;  %v90_v28 = vld [vmem:[#allocation6] sm:$0xff]  ;;  %vm329_vm10 = vcmp.ge.s32.totalorder %v76_v18, 0 }
  0x21   :  { %v65_v9 = vadd.f32 %v64_v7, %v57_v6  ;;  %v330_v34 = vsel %vm329_vm10, 1, %v492_v1  ;;  %v349_v43 = vld [vmem:[%s554_s3] sm:$0xff]  ;;  %s496_s3 = smov [#allocation8]  }
  0x22   :  { %vm80_vm2 = vcmp.ge.s32.totalorder %v79_v19, 0  ;;  %vm81_vm3 = vcmp.lt.s32.totalorder %v79_v19, 16  ;;  %vm243_vm5 = vcmp.ge.s32.totalorder %v242_v21, 0  ;;  %vm244_vm6 = vcmp.lt.s32.totalorder %v242_v21, 16  ;;  %v356_v49 = vld [vmem:[%s555_s4] sm:$0xff]  ;;  %s371_s10 = sshll.u32 %s496_s3, 4  ;;  %s372_s10 = int_to_ptr.vmem [resolvable:$true] %s371_s10 }
  0x23   :  { %v66_v11 = vadd.f32 %v65_v9, %v58_v8  ;;  %vm82_vm4 = vmand %vm80_vm2, %vm81_vm3  ;;  %v334_v36 = vrot.slane %v330_v34, %v86_v23  ;;  %s461_s11 = scalar_lea.vmem %s372_s10, 128  ;;  %p466_p11 = scmp.lt.s32.totalorder %s372_s10, %s372_s10 }
  0x24   :  { %v83_v24 = vsel %vm82_vm4, 1, %v492_v1  ;;  %vm245_vm7 = vmand %vm243_vm5, %vm244_vm6  ;;  %p462_p10 = scmp.ne.s32.totalorder %s372_s10, %s461_s11  ;;  %p467_p12 = scmp.lt.s32.totalorder %s461_s11, %s461_s11 }
  0x25   :  { %v67_v13 = vadd.f32 %v66_v11, %v59_v10  ;;  %v87_v25 = vrot.slane %v83_v24, %v86_v23  ;;  %v246_v26 = vsel %vm245_vm7, 1, %v492_v1  ;;  %vm335_vm11 = vcmp.eq.s32.totalorder %v334_v36, 1 }
  0x26   :  { %v250_v27 = vrot.slane %v246_v26, %v86_v23  ;;  %p468_p13 = por %p467_p12, %p466_p11 }
  0x27   :  { %v68_v15 = vadd.f32 %v67_v13, %v60_v12  ;;  %vm88_vm8 = vcmp.eq.s32.totalorder %v87_v25, 1 }
  0x28   :  { %vm251_vm9 = vcmp.eq.s32.totalorder %v250_v27, 1  ;;  %p469_p0 = pnand %p468_p13, %p462_p10 }
  0x29   :  { %v69_v16 = vadd.f32 %v68_v15, %v61_v14 }
  0x2b   :  { %77 = vrot.lane.b32.xlu0 %v69_v16, %s494_s0  ;;  %393 = vmatpush3.msra.mxu0 %v69_v16 }
  0x2c   :  { %395 = vmatmul.mubr.msk.f32.vlgmr.msra.gmra.mxu0 %vm93_vm1, %v92_v17  ;;  %402 = vmatprep.subr.mxu0 %v491_v0 }
  0x2d   :  { %404 = vmatprep.mubr.msk.f32.mxu0 %vm493_vm0, %v491_v0 }
  0x2f   :  { %240 = vrot.lane.b32.xlu0 %v69_v16, %s495_s1 }
  0x33   :  { %352 = vperm.xlu0 %417, %v349_v43  }
  0x9d   :  { %v78_v29 = vpop.permute.xlu0 %77 }
  0x9e   :  { %398 = vmatpush3.msk.msra.mxu1 %vm88_vm8, %v78_v29 }
  0x9f   :  { %400 = vmatmul.mubr.msk.f32.vlgmr.msra.gmra.mxu1 %vm93_vm1, %v90_v28 }
  0xa1   :  { %v241_v31 = vpop.permute.xlu0 %240 }
  0xa2   :  { %403 = vmatpush3.msk.msra.mxu0 %vm251_vm9, %v241_v31 }
  0xa3   :  { %405 = vmatmul.mubr.msk.f32.vlgmr.msra.gmra.mxu0 %vm93_vm1, %v254_v30 }
  0xae   :  { %v353_v54 = vpop.permute.xlu0 %352 }
  0xec   :  { %v163_v32 = vpop.f32.mrf.mxu0 }
  0xee   :  { %v396_v33 = vpop.f32.mrf.mxu0 }
 0x15f   :  { %v236_v35 = vpop.f32.mrf.mxu1 }
 0x160   :  { %v237_v38 = vadd.f32 %v236_v35, %v163_v32 }
 0x161   :  { %v401_v37 = vpop.f32.mrf.mxu1 }
 0x163   :  { %v324_v39 = vpop.f32.mrf.mxu0 }
 0x164   :  { %v328_v40 = vadd.f32 %v324_v39, %v237_v38 }
 0x165   :  { %v406_v41 = vpop.f32.mrf.mxu0 }
 0x166   :  { %v336_v42 = vsel %vm335_vm11, %v328_v40, 0.0 }
 0x167   :  { %337 = vadd.xlane.f32.xlu1 %v336_v42 }
 0x1f0   :  { %v338_v44 = vpop.xlane.xlu1 %337 }
 0x1f1   :  { %v339_v45 = vmul.f32 0.03125, %v338_v44 }
 0x1f3   :  { %v340_v46 = vsub.f32 %v328_v40, %v339_v45 }
 0x1f5   :  { %v341_v47 = vsel %vm335_vm11, %v340_v46, 0.0 }
 0x1f6   :  { %v342_v48 = vmul.f32 %v341_v47, %v341_v47 }
 0x1f8   :  { %343 = vadd.xlane.f32.xlu1 %v342_v48 }
 0x209   :  { %359 = vperm.xlu1 %418, %v356_v49  }
 0x281   :  { %v344_v50 = vpop.xlane.xlu1 %343 }
 0x282   :  { %v345_v51 = vmul.f32 0.03125, %v344_v50 }
 0x284   :  { %v346_v52 = vadd.f32 1e-05, %v345_v51 }
 0x285   :  { %v360_v56 = vpop.permute.xlu1 %359 }
 0x286   :  { %419 = vrsqrt.f32 %v346_v52 }
 0x293   :  { %v420_v53 = vpop.eup %419 }
 0x294   :  { %v348_v55 = vmul.f32 %v420_v53, %v341_v47 }
 0x296   :  { %v355_v57 = vmul.f32 %v353_v54, %v348_v55 }
 0x298   :  { %v362_v58 = vadd.f32 %v360_v56, %v355_v57 }
 0x29a   :  { %v363_v59 = vmax.f32 %v362_v58, 0.0 }
 0x29c   :  { %364 = vst [vmem:[#allocation8] sm:$0xff] %v363_v59 }
 0x29d   :  { %472 = shalt.err (!%p469_p0)
}
 0x29e   :  { %374 = dma.vmem_to_hbm [thread:$0]  %s372_s10, 128, %s556_s5, [#allocation5]  }
 0x29f   :  { %485 = dma.done.wait [#allocation5], 128  }
 0x2a0   :  { %486 = vsyncadd [#allocation5], 4294967168 }
 0x2a1   :  { %378 = vsyncpa [#allocation4], 1 }
 0x2a2   :  { %379 = vsyncpa [#allocation7], 1 }
 0x2a3   :  { %380 = vsyncpa [#allocation5], 1 }

</bundles_post_ra>
